<compile_context>
chip_gen: v6e
topology: v6e:2x2x1
jax: 0.10.0
libtpu: 0.0.40
codegen_flags: <defaults>
</compile_context>

<pallas_src>
import functools

import numpy as np
import jax
import jax.numpy as jnp
from jax.experimental import pallas as pl
from jax.experimental.pallas import tpu as pltpu


def _round_up(x, m):
    return ((x + m - 1) // m) * m


# -----------------------------------------------------------------------------
# Pallas kernels
# -----------------------------------------------------------------------------
def _gemm_fused_kernel(relu, has_res, x_ref, w_ref, b_ref, *rest):
    """Single-K-step GEMM + (folded-BN) bias + optional residual + optional ReLU.

    Grid = (M/tm, N/tn).  No accumulator scratch: o = act(x @ w + b [+ r]).
    x (tm,K) bf16, w (K,tn) bf16, b (1,tn) f32, [r (tm,tn) bf16], o (tm,tn) bf16.
    """
    if has_res:
        r_ref, o_ref = rest
    else:
        (o_ref,) = rest
    y = jnp.dot(x_ref[...], w_ref[...], preferred_element_type=jnp.float32)
    y = y + b_ref[...]
    if has_res:
        y = y + r_ref[...].astype(jnp.float32)
    if relu:
        y = jnp.maximum(y, 0.0)
    o_ref[...] = y.astype(o_ref.dtype)


def _gemm_ktiled_kernel(relu, has_res, x_ref, w_ref, b_ref, *rest):
    """Fallback for very large K: grid = (M/tm, N/tn, K/tk) with f32 VMEM acc."""
    if has_res:
        r_ref, o_ref, acc_ref = rest
    else:
        o_ref, acc_ref = rest
    k = pl.program_id(2)

    @pl.when(k == 0)
    def _():
        acc_ref[...] = jnp.zeros_like(acc_ref)

    acc_ref[...] += jnp.dot(x_ref[...], w_ref[...],
                            preferred_element_type=jnp.float32)

    @pl.when(k == pl.num_programs(2) - 1)
    def _():
        y = acc_ref[...] + b_ref[...]
        if has_res:
            y = y + r_ref[...].astype(jnp.float32)
        if relu:
            y = jnp.maximum(y, 0.0)
        o_ref[...] = y.astype(o_ref.dtype)


def _maxpool_kernel(*refs):
    # 9 shifted (tm, C) window views in -> elementwise max out (lane-dense C).
    o_ref = refs[-1]
    m = refs[0][...]
    for r in refs[1:-1]:
        m = jnp.maximum(m, r[...])
    o_ref[...] = m


# -----------------------------------------------------------------------------
# Pallas wrappers
# -----------------------------------------------------------------------------
def fused_gemm(patches, w, bias, residual=None, relu=True):
    """out[bf16] = act((patches @ w) + bias [+ residual]).

    patches: (M, K); w: (K, Cout) f32 with BN folded, Cout % 128 == 0 (lane dense);
    bias: (Cout,) f32; residual: (M, Cout) bf16.
    """
    M, K = patches.shape
    Kw, Cout = w.shape
    assert Kw == K and Cout % 128 == 0

    xp = patches.astype(jnp.bfloat16)
    wp = w.astype(jnp.bfloat16)
    bp = bias.reshape(1, Cout).astype(jnp.float32)

    # Lane-align K. Only the 7x7 stem (tiny Cin) needs this pad; every 3x3 conv on
    # 128-channel-padded activations already has K % 128 == 0 -> no HBM copy.
    k_al = _round_up(K, 128)
    if k_al != K:
        xp = jnp.pad(xp, ((0, 0), (0, k_al - K)))
        wp = jnp.pad(wp, ((0, k_al - K), (0, 0)))

    # Output-channel tile: match the 256-wide MXU where possible.
    tn = 256 if Cout % 256 == 0 else 128

    # M tile: full-dim block when small (no pad / no slice), else 512-row tiles.
    TM_CAP = 512
    if M <= TM_CAP:
        tm, m_pad = M, M
    else:
        tm = TM_CAP
        m_pad = _round_up(M, tm)
        xp = jnp.pad(xp, ((0, m_pad - M), (0, 0)))

    has_res = residual is not None
    if has_res:
        rp = residual.astype(jnp.bfloat16)
        if m_pad != M:
            rp = jnp.pad(rp, ((0, m_pad - M), (0, 0)))

    # Single K step whenever the (tm,K)+(K,tn) blocks comfortably fit in VMEM.
    K_CAP = 8192
    single_k = k_al <= K_CAP

    # Explicit VMEM limit from the double-buffered block budget (safe on v7x 64 MiB).
    blk_bytes = tm * k_al * 2 + k_al * tn * 2 + tn * 4 + tm * tn * 2
    if has_res:
        blk_bytes += tm * tn * 2
    vmem_limit = int(min(max(2 * blk_bytes + tm * tn * 4 + (4 << 20), 16 << 20),
                         44 << 20))

    flops = 2 * m_pad * Cout * k_al
    bytes_accessed = (m_pad * k_al + k_al * Cout + m_pad * Cout) * 2 + Cout * 4
    if has_res:
        bytes_accessed += m_pad * Cout * 2

    if single_k:
        in_specs = [
            pl.BlockSpec((tm, k_al), lambda i, j: (i, 0)),
            pl.BlockSpec((k_al, tn), lambda i, j: (0, j)),
            pl.BlockSpec((1, tn), lambda i, j: (0, j)),
        ]
        args = [xp, wp, bp]
        if has_res:
            in_specs.append(pl.BlockSpec((tm, tn), lambda i, j: (i, j)))
            args.append(rp)
        out = pl.pallas_call(
            functools.partial(_gemm_fused_kernel, relu, has_res),
            out_shape=jax.ShapeDtypeStruct((m_pad, Cout), jnp.bfloat16),
            grid_spec=pltpu.PrefetchScalarGridSpec(
                num_scalar_prefetch=0,
                grid=(m_pad // tm, Cout // tn),
                in_specs=in_specs,
                out_specs=pl.BlockSpec((tm, tn), lambda i, j: (i, j)),
            ),
            compiler_params=pltpu.CompilerParams(
                dimension_semantics=("parallel", "parallel"),
                vmem_limit_bytes=vmem_limit),
            cost_estimate=pl.CostEstimate(flops=flops, transcendentals=0,
                                          bytes_accessed=int(bytes_accessed)),
        )(*args)
    else:
        # Large-K fallback: tile the reduction across the innermost grid axis.
        nk = -(-k_al // K_CAP)
        tk = _round_up(-(-k_al // nk), 128)
        k_pad = nk * tk
        if k_pad != k_al:
            xp = jnp.pad(xp, ((0, 0), (0, k_pad - k_al)))
            wp = jnp.pad(wp, ((0, k_pad - k_al), (0, 0)))
        in_specs = [
            pl.BlockSpec((tm, tk), lambda i, j, k: (i, k)),
            pl.BlockSpec((tk, tn), lambda i, j, k: (k, j)),
            pl.BlockSpec((1, tn), lambda i, j, k: (0, j)),
        ]
        args = [xp, wp, bp]
        if has_res:
            in_specs.append(pl.BlockSpec((tm, tn), lambda i, j, k: (i, j)))
            args.append(rp)
        out = pl.pallas_call(
            functools.partial(_gemm_ktiled_kernel, relu, has_res),
            out_shape=jax.ShapeDtypeStruct((m_pad, Cout), jnp.bfloat16),
            grid_spec=pltpu.PrefetchScalarGridSpec(
                num_scalar_prefetch=0,
                grid=(m_pad // tm, Cout // tn, k_pad // tk),
                in_specs=in_specs,
                out_specs=pl.BlockSpec((tm, tn), lambda i, j, k: (i, j)),
                scratch_shapes=[pltpu.VMEM((tm, tn), jnp.float32)],
            ),
            compiler_params=pltpu.CompilerParams(
                dimension_semantics=("parallel", "parallel", "arbitrary"),
                vmem_limit_bytes=vmem_limit),
            cost_estimate=pl.CostEstimate(flops=flops, transcendentals=0,
                                          bytes_accessed=int(bytes_accessed)),
        )(*args)

    if m_pad != M:
        out = out[:M]
    return out


def _im2col(x_nhwc, kh, kw, stride, pad):
    """Extract conv patches. Returns ((N*OH*OW, kh*kw*C), (N, OH, OW))."""
    N, H, W, C = x_nhwc.shape
    xp = jnp.pad(x_nhwc, ((0, 0), (pad, pad), (pad, pad), (0, 0)))
    OH = (H + 2 * pad - kh) // stride + 1
    OW = (W + 2 * pad - kw) // stride + 1
    cols = []
    for ky in range(kh):
        for kx in range(kw):
            v = jax.lax.slice(
                xp,
                (0, ky, kx, 0),
                (N, ky + stride * (OH - 1) + 1, kx + stride * (OW - 1) + 1, C),
                (1, stride, stride, 1),
            )  # (N, OH, OW, C)
            cols.append(v)
    patches = jnp.stack(cols, axis=3)                # (N, OH, OW, kh*kw, C)
    patches = patches.reshape(N * OH * OW, kh * kw * C)
    return patches, (N, OH, OW)


def conv_bn_act(x_nhwc, w_oihw, scale, bias, stride, pad,
                residual=None, relu=True, cout_pad=None):
    """Conv2d (OIHW, no conv bias) + folded BN affine + optional add + optional ReLU.

    `x_nhwc` may carry zero-padded extra channels (>= weight Cin): those hit zero
    weight rows, and output channels beyond Cout (up to cout_pad) are exactly zero,
    so the lane-dense padded layout is carried through the network exactly.
    Output: (N, OH, OW, cout_pad) bf16.
    """
    Cout, Cin, KH, KW = w_oihw.shape
    Cin_act = x_nhwc.shape[-1]
    if cout_pad is None:
        cout_pad = _round_up(Cout, 128)

    patches, (N, OH, OW) = _im2col(x_nhwc.astype(jnp.bfloat16), KH, KW, stride, pad)

    # (KH,KW,Cin,Cout): fold BN scale, zero-pad Cin->Cin_act and Cout->cout_pad.
    w2 = jnp.transpose(w_oihw, (2, 3, 1, 0)) * scale.reshape(1, 1, 1, Cout)
    w2 = jnp.pad(w2, ((0, 0), (0, 0), (0, Cin_act - Cin), (0, cout_pad - Cout)))
    w2 = w2.reshape(KH * KW * Cin_act, cout_pad)
    b2 = jnp.pad(bias, (0, cout_pad - Cout))

    res2 = None
    if residual is not None:
        res2 = residual.reshape(N * OH * OW, cout_pad)

    out = fused_gemm(patches, w2, b2, residual=res2, relu=relu)
    return out.reshape(N, OH, OW, cout_pad)


def maxpool_3x3_s2(x_nhwc):
    """MaxPool2d(kernel_size=3, stride=2, padding=1); C is lane-dense (128-padded)."""
    N, H, W, C = x_nhwc.shape
    k, stride, pad = 3, 2, 1
    xp = jnp.pad(x_nhwc, ((0, 0), (pad, pad), (pad, pad), (0, 0)),
                 constant_values=-jnp.inf)
    OH = (H + 2 * pad - k) // stride + 1
    OW = (W + 2 * pad - k) // stride + 1
    M = N * OH * OW
    views = []
    for ky in range(k):
        for kx in range(k):
            v = jax.lax.slice(
                xp,
                (0, ky, kx, 0),
                (N, ky + stride * (OH - 1) + 1, kx + stride * (OW - 1) + 1, C),
                (1, stride, stride, 1),
            )
            views.append(v.reshape(M, C))

    TM_CAP = 512
    if M <= TM_CAP:
        tm, m_pad = M, M
    else:
        tm = TM_CAP
        m_pad = _round_up(M, tm)
        views = [jnp.pad(v, ((0, m_pad - M), (0, 0))) for v in views]

    spec = pl.BlockSpec((tm, C), lambda i: (i, 0))
    out = pl.pallas_call(
        _maxpool_kernel,
        out_shape=jax.ShapeDtypeStruct((m_pad, C), x_nhwc.dtype),
        grid_spec=pltpu.PrefetchScalarGridSpec(
            num_scalar_prefetch=0,
            grid=(m_pad // tm,),
            in_specs=[spec] * 9,
            out_specs=spec,
        ),
        compiler_params=pltpu.CompilerParams(dimension_semantics=("parallel",)),
    )(*views)
    if m_pad != M:
        out = out[:M]
    return out.reshape(N, OH, OW, C)


# -----------------------------------------------------------------------------
# Parameters (deterministic synthetic init, shapes per resnet18 BasicBlocks)
# -----------------------------------------------------------------------------
LAYER_SPECS = [(64, 64, 1), (64, 128, 2), (128, 256, 2), (256, 512, 2)]  # (cin,cout,stride)


def _conv_weight(key, cout, cin, kh, kw):
    fan_in = cin * kh * kw
    return ((2.0 / fan_in) ** 0.5) * jax.random.normal(key, (cout, cin, kh, kw), jnp.float32)


def _bn_fold(key, c, eps=1e-5):
    k1, k2, k3, k4 = jax.random.split(key, 4)
    gamma = 1.0 + 0.1 * jax.random.normal(k1, (c,), jnp.float32)
    beta = 0.1 * jax.random.normal(k2, (c,), jnp.float32)
    mean = 0.05 * jax.random.normal(k3, (c,), jnp.float32)
    var = 1.0 + 0.1 * jax.random.uniform(k4, (c,), jnp.float32)
    scale = gamma / jnp.sqrt(var + eps)
    bias = beta - mean * scale
    return scale, bias


def make_resnet_params(key, in_channels, n_blocks=4):
    keys = iter(jax.random.split(key, 256))
    nk = lambda: next(keys)
    params = {"stem_w": _conv_weight(nk(), 64, in_channels, 7, 7), "layers": []}
    n_layers = max(0, n_blocks - 1)            # iBlock=1 is maxpool; 2.. are resnet layers
    for li in range(n_layers):
        cin, cout, stride = LAYER_SPECS[li]
        b0 = {"stride": stride, "w1": _conv_weight(nk(), cout, cin, 3, 3)}
        b0["s1"], b0["b1"] = _bn_fold(nk(), cout)
        b0["w2"] = _conv_weight(nk(), cout, cout, 3, 3)
        b0["s2"], b0["b2"] = _bn_fold(nk(), cout)
        if stride != 1 or cin != cout:
            b0["down_w"] = _conv_weight(nk(), cout, cin, 1, 1)
            b0["down_s"], b0["down_b"] = _bn_fold(nk(), cout)
        else:
            b0["down_w"] = None
        b1 = {"stride": 1, "w1": _conv_weight(nk(), cout, cout, 3, 3), "down_w": None}
        b1["s1"], b1["b1"] = _bn_fold(nk(), cout)
        b1["w2"] = _conv_weight(nk(), cout, cout, 3, 3)
        b1["s2"], b1["b2"] = _bn_fold(nk(), cout)
        params["layers"].append((b0, b1))
    return params


# -----------------------------------------------------------------------------
# Forward pass (Pallas, bf16 activations carried channel-padded to 128 lanes)
# -----------------------------------------------------------------------------
def basic_block(x, p):
    stride = p["stride"]
    cout_pad = _round_up(p["w1"].shape[0], 128)
    if p["down_w"] is not None:
        identity = conv_bn_act(x, p["down_w"], p["down_s"], p["down_b"],
                               stride=stride, pad=0, relu=False, cout_pad=cout_pad)
    else:
        identity = x
    out = conv_bn_act(x, p["w1"], p["s1"], p["b1"], stride=stride, pad=1,
                      relu=True, cout_pad=cout_pad)
    out = conv_bn_act(out, p["w2"], p["s2"], p["b2"], stride=1, pad=1,
                      residual=identity, relu=True, cout_pad=cout_pad)
    return out


def resnet_forward(params, x_nchw, n_blocks=4):
    """Matches Resnet.forward: x = stem_conv(x); then children[3 .. 3+n_blocks-1]."""
    x = jnp.transpose(x_nchw, (0, 2, 3, 1)).astype(jnp.bfloat16)   # NCHW -> NHWC
    ones = jnp.ones((64,), jnp.float32)
    zeros = jnp.zeros((64,), jnp.float32)
    # self.input conv (7x7, stride 2, pad 3, no bias); resnet18 bn1/relu are skipped.
    x = conv_bn_act(x, params["stem_w"], ones, zeros, stride=2, pad=3,
                    relu=False, cout_pad=128)
    feats = []
    for ib in range(1, n_blocks + 1):
        if ib == 1:
            x = maxpool_3x3_s2(x)              # children[3] = MaxPool2d(3,2,1)
            cout_true = 64
        else:
            b0, b1 = params["layers"][ib - 2]  # children[4..] = layer1..layer3
            x = basic_block(x, b0)
            x = basic_block(x, b1)
            cout_true = LAYER_SPECS[ib - 2][1]
        f = x[..., :cout_true].astype(jnp.float32)     # drop lane padding for export
        feats.append(jnp.transpose(f, (0, 3, 1, 2)))   # back to NCHW, like PyTorch
    return feats[-1], feats


# -----------------------------------------------------------------------------
# Pure-JAX reference: same math (bf16 operands + activations, f32 accumulate)
# -----------------------------------------------------------------------------
def _ref_conv(x, w_oihw, scale, bias, stride, pad, residual=None, relu=True):
    w = jnp.transpose(w_oihw, (2, 3, 1, 0)) * scale.reshape(1, 1, 1, -1)  # HWIO, BN folded
    y = jax.lax.conv_general_dilated(
        x.astype(jnp.bfloat16), w.astype(jnp.bfloat16),
        (stride, stride), ((pad, pad), (pad, pad)),
        dimension_numbers=("NHWC", "HWIO", "NHWC"),
        preferred_element_type=jnp.float32)
    y = y + bias
    if residual is not None:
        y = y + residual.astype(jnp.float32)
    if relu:
        y = jnp.maximum(y, 0.0)
    return y.astype(jnp.bfloat16)


def _ref_maxpool(x):
    return jax.lax.reduce_window(x, jnp.array(-jnp.inf, x.dtype), jax.lax.max,
                                 (1, 3, 3, 1), (1, 2, 2, 1),
                                 ((0, 0), (1, 1), (1, 1), (0, 0)))


def _ref_block(x, p):
    stride = p["stride"]
    identity = (_ref_conv(x, p["down_w"], p["down_s"], p["down_b"], stride, 0, relu=False)
                if p["down_w"] is not None else x)
    out = _ref_conv(x, p["w1"], p["s1"], p["b1"], stride, 1, relu=True)
    out = _ref_conv(out, p["w2"], p["s2"], p["b2"], 1, 1, residual=identity, relu=True)
    return out


def ref_forward(params, x_nchw, n_blocks=4):
    x = jnp.transpose(x_nchw, (0, 2, 3, 1)).astype(jnp.bfloat16)
    x = _ref_conv(x, params["stem_w"], jnp.ones((64,), jnp.float32),
                  jnp.zeros((64,), jnp.float32), 2, 3, relu=False)
    feats = []
    for ib in range(1, n_blocks + 1):
        if ib == 1:
            x = _ref_maxpool(x)
        else:
            b0, b1 = params["layers"][ib - 2]
            x = _ref_block(x, b0)
            x = _ref_block(x, b1)
        feats.append(jnp.transpose(x.astype(jnp.float32), (0, 3, 1, 2)))
    return feats[-1], feats


def _check_close(name, actual, desired):
    """Scale-relative check: robust to bf16 rounding-order noise compounding over
    many layers (both paths do identical bf16 casts, but f32 partial sums differ in
    accumulation order), while still catching real indexing / stride / fusion bugs
    (those produce errors on the order of the output scale)."""
    a = np.asarray(actual, dtype=np.float32)
    d = np.asarray(desired, dtype=np.float32)
    scale = max(1.0, float(np.max(np.abs(d))))
    max_err = float(np.max(np.abs(a - d)))
    mean_err = float(np.mean(np.abs(a - d)))
    assert max_err <= 5e-2 * scale, f"{name}: max_err={max_err:.4e} scale={scale:.3e}"
    assert mean_err <= 6e-3 * scale, f"{name}: mean_err={mean_err:.4e} scale={scale:.3e}"


# -----------------------------------------------------------------------------
if __name__ == "__main__":
    key = jax.random.PRNGKey(0)
    k_x, k_p = jax.random.split(key)

    in_channels, n_blocks = 4, 4
    N, H, W = 2, 32, 32
    x = jax.random.normal(k_x, (N, in_channels, H, W), jnp.float32)   # NCHW, like PyTorch
    params = make_resnet_params(k_p, in_channels, n_blocks)

    out, feats = resnet_forward(params, x, n_blocks)
    out = jax.block_until_ready(out)
    for f in feats:
        jax.block_until_ready(f)

    # Sanity check against a pure-JAX reference of the same math.
    ref_out, ref_feats = ref_forward(params, x, n_blocks)
    _check_close("out", out, ref_out)
    for i, (f, rf) in enumerate(zip(feats, ref_feats)):
        _check_close(f"feat{i}", f, rf)

    print("KERNEL_OK")
</pallas_src>

<mosaic_0001>
module attributes {stable_mosaic.version = 11 : i64} {
  func.func @_gemm_fused_kernel(%arg0: i32, %arg1: i32, %arg2: memref<512x256xbf16, #tpu.memory_space<vmem>>, %arg3: memref<256x128xbf16, #tpu.memory_space<vmem>>, %arg4: memref<1x128xf32, #tpu.memory_space<vmem>>, %arg5: memref<512x128xbf16, #tpu.memory_space<vmem>>) attributes {dimension_semantics = [#tpu.dimension_semantics<parallel>, #tpu.dimension_semantics<parallel>], iteration_bounds = array<i64: 1, 1>, scalar_prefetch = 0 : i64, scratch_operands = 0 : i64, tpu.core_type = #tpu.core_type<tc>, window_params = [{transform_indices = @transform_0, window_bounds = array<i64: 512, 256>}, {transform_indices = @transform_1, window_bounds = array<i64: 256, 128>}, {transform_indices = @transform_2, window_bounds = array<i64: 1, 128>}, {transform_indices = @transform_3, window_bounds = array<i64: 512, 128>}]} {
    %c0 = arith.constant 0 : index
    %c0_0 = arith.constant 0 : index
    %0 = vector.load %arg2[%c0, %c0_0] : memref<512x256xbf16, #tpu.memory_space<vmem>>, vector<512x256xbf16>
    %c0_1 = arith.constant 0 : index
    %c0_2 = arith.constant 0 : index
    %1 = vector.load %arg3[%c0_1, %c0_2] : memref<256x128xbf16, #tpu.memory_space<vmem>>, vector<256x128xbf16>
    %cst = arith.constant dense<0.000000e+00> : vector<512x128xf32>
    %2 = tpu.matmul %0, %1, %cst {dimension_numbers = #tpu.dot_dimension_numbers<[1], [0], [0], [1], [0, 0, 1, 1], [], []>} : vector<512x256xbf16>, vector<256x128xbf16>, vector<512x128xf32> -> vector<512x128xf32>
    %c0_3 = arith.constant 0 : index
    %c0_4 = arith.constant 0 : index
    %3 = vector.load %arg4[%c0_3, %c0_4] : memref<1x128xf32, #tpu.memory_space<vmem>>, vector<1x128xf32>
    %4 = vector.broadcast %3 : vector<1x128xf32> to vector<512x128xf32>
    %5 = arith.addf %2, %4 : vector<512x128xf32>
    %6 = arith.truncf %5 : vector<512x128xf32> to vector<512x128xbf16>
    %c0_5 = arith.constant 0 : index
    %c0_6 = arith.constant 0 : index
    %7 = vector.load %arg5[%c0_5, %c0_6] : memref<512x128xbf16, #tpu.memory_space<vmem>>, vector<512x128xbf16>
    tpu.vector_store %arg5[%c0_5, %c0_6], %6 {strides = array<i32>} : memref<512x128xbf16, #tpu.memory_space<vmem>>, vector<512x128xbf16>,
    return
  }
  func.func @transform_0(%arg0: i32, %arg1: i32) -> (i32, i32) {
    %c0_i32 = arith.constant 0 : i32
    %c0_i32_0 = arith.constant 0 : i32
    return %arg0, %c0_i32 : i32, i32
  }
  func.func @transform_1(%arg0: i32, %arg1: i32) -> (i32, i32) {
    %c0_i32 = arith.constant 0 : i32
    %c0_i32_0 = arith.constant 0 : i32
    return %c0_i32, %arg1 : i32, i32
  }
  func.func @transform_2(%arg0: i32, %arg1: i32) -> (i32, i32) {
    %c0_i32 = arith.constant 0 : i32
    %c0_i32_0 = arith.constant 0 : i32
    return %c0_i32, %arg1 : i32, i32
  }
  func.func @transform_3(%arg0: i32, %arg1: i32) -> (i32, i32) {
    %c0_i32 = arith.constant 0 : i32
    return %arg0, %arg1 : i32, i32
  }
}

</mosaic_0001>

<bundles_post_ra>
// kernel: tpu_custom_call.1
= control target key start
LH: loop header
LB: loop body
LE: loop exit
PB: predicated region body
PF: predicated region fallthrough
CT: control target
= control target key end

     0   :  { %8 = vsyncpa [#allocation3], 0  ;;  %s1952_s0 = inlined_call_operand.hbm [shape: bf16[512,256], index: 0, kind: input, shape index: {}]   ;;  %s1953_s1 = inlined_call_operand.hbm [shape: bf16[256,128], index: 1, kind: input, shape index: {}]   ;;  %s1954_s2 = inlined_call_operand.vmem [shape: f32[1,128], index: 2, kind: input, shape index: {}]   ;;  %s1955_s3 = inlined_call_operand.hbm [shape: bf16[512,128], index: 3, kind: output, shape index: {}]  }
   0x1   :  { %9 = vsyncpa [#allocation6], 0 }
   0x2   :  { %10 = vsyncpa [#allocation4], 0  ;;  %s1808_s12 = smov [#allocation2]  }
   0x3   :  { %s16_s13 = sshll.u32 %s1808_s12, 4  ;;  %s17_s13 = int_to_ptr.vmem [resolvable:$true] %s16_s13 }
   0x4   :  { %s1750_s14 = scalar_lea.vmem %s17_s13, 8192  ;;  %p1755_p1 = scmp.lt.s32.totalorder %s17_s13, %s17_s13 }
   0x5   :  { %p1751_p0 = scmp.ne.s32.totalorder %s17_s13, %s1750_s14  ;;  %p1756_p2 = scmp.lt.s32.totalorder %s1750_s14, %s1750_s14 }
   0x7   :  { %p1757_p3 = por %p1756_p2, %p1755_p1 }
   0x9   :  { %p1758_p4 = pnand %p1757_p3, %p1751_p0 }
   0xb   :  { %1761 = shalt.err (!%p1758_p4)
}
   0xc   :  { %s1809_s15 = smov 128   ;;  %s1810_s16 = smov 8  }
   0xd   :  { %22 = dma.hbm_to_vmem [thread:$0]  %s1952_s0, 8192, %s17_s13, [#allocation3], %s1809_s15, %s1809_s15, %s1810_s16  }
   0xe   :  { %s1811_s19 = smov [#allocation5]  }
   0xf   :  { %s28_s20 = sshll.u32 %s1811_s19, 4  ;;  %s29_s20 = int_to_ptr.vmem [resolvable:$true] %s28_s20 }
  0x10   :  { %s1770_s21 = scalar_lea.vmem %s29_s20, 2048  ;;  %p1775_p6 = scmp.lt.s32.totalorder %s29_s20, %s29_s20 }
  0x11   :  { %p1771_p5 = scmp.ne.s32.totalorder %s29_s20, %s1770_s21  ;;  %p1776_p7 = scmp.lt.s32.totalorder %s1770_s21, %s1770_s21 }
  0x13   :  { %p1777_p8 = por %p1776_p7, %p1775_p6 }
  0x15   :  { %p1778_p9 = pnand %p1777_p8, %p1771_p5 }
  0x17   :  { %1781 = shalt.err (!%p1778_p9)
}
  0x18   :  { %s1812_s22 = smov 64   ;;  %s1813_s23 = smov 4  }
  0x19   :  { %34 = dma.hbm_to_vmem [thread:$0]  %s1953_s1, 2048, %s29_s20, [#allocation6], %s1812_s22, %s1812_s22, %s1813_s23  }
  0x1a   :  { %1802 = dma.done.wait [#allocation3], 8192  }
  0x1b   :  { %1803 = vsyncadd [#allocation3], 4294959104 }
  0x1c   :  { %1804 = dma.done.wait [#allocation6], 2048  }
  0x1d   :  { %1805 = vsyncadd [#allocation6], 4294965248  ;;  %v1814_v0 = vmov 0   ;;  %v1630_v1 = vld [vmem:[#allocation5 + $0x38] sm:$0xff]   ;;  %v1631_v2 = vld [vmem:[#allocation5 + $0x30] sm:$0xff]  }
  0x1e   :  { %563 = vmatprep.subr.bf16.mxu0 %v1814_v0  ;;  %1590 = vmatprep.subr.bf16.mxu1 %v1814_v0  ;;  %v1632_v3 = vld [vmem:[#allocation5 + $0x28] sm:$0xff]   ;;  %v1633_v4 = vld [vmem:[#allocation5 + $0x20] sm:$0xff]   ;;  %v1634_v5 = vld [vmem:[#allocation5 + $0x18] sm:$0xff]  }
  0x1f   :  { %564 = vmatpush1.bf16.msra.mxu0 %v1630_v1  ;;  %1606 = vmatpush1.bf16.msra.mxu1 %v1630_v1  ;;  %v1648_v6 = vld [vmem:[#allocation2 + $0x4] ss:$8 sps:$4 sm:$0xff]   ;;  %v1635_v7 = vld [vmem:[#allocation5 + $0x10] sm:$0xff]   ;;  %v1638_v11 = vld [vmem:[#allocation5 + $0x78] sm:$0xff]  }
  0x20   :  { %565 = vmatprep.subr.bf16.mxu0 %v1814_v0  ;;  %1591 = vmatprep.subr.bf16.mxu1 %v1814_v0  ;;  %v1651_v8 = vld [vmem:[#allocation2 + $0x104] ss:$8 sps:$4 sm:$0xff]   ;;  %v1639_v12 = vld [vmem:[#allocation5 + $0x70] sm:$0xff]   ;;  %v1642_v15 = vld [vmem:[#allocation5 + $0x58] sm:$0xff]  }
  0x21   :  { %595 = vmatprep.mubr.bf16.mxu0 %v1648_v6  ;;  %723 = vmatprep.mubr.bf16.mxu1 %v1651_v8  ;;  %v1636_v9 = vld [vmem:[#allocation5 + $0x8] sm:$0xff]   ;;  %v1637_v10 = vld [vmem:[#allocation5] sm:$0xff]   ;;  %v1643_v16 = vld [vmem:[#allocation5 + $0x50] sm:$0xff]  }
  0x22   :  { %v1640_v13 = vld [vmem:[#allocation5 + $0x68] sm:$0xff]   ;;  %v1641_v14 = vld [vmem:[#allocation5 + $0x60] sm:$0xff]   ;;  %v1652_v21 = vld [vmem:[#allocation2 + $0x14] ss:$8 sps:$4 sm:$0xff]  }
  0x23   :  { %566 = vmatpush1.bf16.msra.mxu0 %v1631_v2  ;;  %1607 = vmatpush1.bf16.msra.mxu1 %v1631_v2  ;;  %v1644_v17 = vld [vmem:[#allocation5 + $0x48] sm:$0xff]   ;;  %v1645_v18 = vld [vmem:[#allocation5 + $0x40] sm:$0xff]   ;;  %v1654_v22 = vld [vmem:[#allocation2 + $0x114] ss:$8 sps:$4 sm:$0xff]  }
  0x24   :  { %567 = vmatprep.subr.bf16.mxu0 %v1814_v0  ;;  %1592 = vmatprep.subr.bf16.mxu1 %v1814_v0  ;;  %v1646_v19 = vld [vmem:[#allocation2] ss:$8 sps:$4 sm:$0xff]   ;;  %v1656_v23 = vld [vmem:[#allocation2 + $0x10] ss:$8 sps:$4 sm:$0xff]   ;;  %v1658_v25 = vld [vmem:[#allocation2 + $0x24] ss:$8 sps:$4 sm:$0xff]  }
  0x25   :  { %v1649_v20 = vld [vmem:[#allocation2 + $0x100] ss:$8 sps:$4 sm:$0xff]   ;;  %v1657_v24 = vld [vmem:[#allocation2 + $0x110] ss:$8 sps:$4 sm:$0xff]   ;;  %v1660_v26 = vld [vmem:[#allocation2 + $0x124] ss:$8 sps:$4 sm:$0xff]  }
  0x26   :  { %v1662_v27 = vld [vmem:[#allocation2 + $0x20] ss:$8 sps:$4 sm:$0xff]   ;;  %v1664_v29 = vld [vmem:[#allocation2 + $0x34] ss:$8 sps:$4 sm:$0xff]   ;;  %v1668_v31 = vld [vmem:[#allocation2 + $0x30] ss:$8 sps:$4 sm:$0xff]  }
  0x27   :  { %568 = vmatpush1.bf16.msra.mxu0 %v1632_v3  ;;  %1608 = vmatpush1.bf16.msra.mxu1 %v1632_v3  ;;  %v1663_v28 = vld [vmem:[#allocation2 + $0x120] ss:$8 sps:$4 sm:$0xff]   ;;  %v1666_v30 = vld [vmem:[#allocation2 + $0x134] ss:$8 sps:$4 sm:$0xff]   ;;  %v1669_v32 = vld [vmem:[#allocation2 + $0x130] ss:$8 sps:$4 sm:$0xff]  }
  0x28   :  { %569 = vmatprep.subr.bf16.mxu0 %v1814_v0  ;;  %1593 = vmatprep.subr.bf16.mxu1 %v1814_v0  ;;  %v1670_v33 = vld [vmem:[#allocation2 + $0x44] ss:$8 sps:$4 sm:$0xff]   ;;  %v1674_v35 = vld [vmem:[#allocation2 + $0x40] ss:$8 sps:$4 sm:$0xff]   ;;  %v1676_v37 = vld [vmem:[#allocation2 + $0x54] ss:$8 sps:$4 sm:$0xff]  }
  0x29   :  { %v1672_v34 = vld [vmem:[#allocation2 + $0x144] ss:$8 sps:$4 sm:$0xff]   ;;  %v1675_v36 = vld [vmem:[#allocation2 + $0x140] ss:$8 sps:$4 sm:$0xff]   ;;  %v1678_v38 = vld [vmem:[#allocation2 + $0x154] ss:$8 sps:$4 sm:$0xff]  }
  0x2a   :  { %v1680_v39 = vld [vmem:[#allocation2 + $0x50] ss:$8 sps:$4 sm:$0xff]   ;;  %v1682_v41 = vld [vmem:[#allocation2 + $0x64] ss:$8 sps:$4 sm:$0xff]   ;;  %v1686_v43 = vld [vmem:[#allocation2 + $0x60] ss:$8 sps:$4 sm:$0xff]  }
  0x2b   :  { %570 = vmatpush1.bf16.msra.mxu0 %v1633_v4  ;;  %1609 = vmatpush1.bf16.msra.mxu1 %v1633_v4  ;;  %v1681_v40 = vld [vmem:[#allocation2 + $0x150] ss:$8 sps:$4 sm:$0xff]   ;;  %v1684_v42 = vld [vmem:[#allocation2 + $0x164] ss:$8 sps:$4 sm:$0xff]   ;;  %v1687_v44 = vld [vmem:[#allocation2 + $0x160] ss:$8 sps:$4 sm:$0xff]  }
  0x2c   :  { %571 = vmatprep.subr.bf16.mxu0 %v1814_v0  ;;  %1594 = vmatprep.subr.bf16.mxu1 %v1814_v0  ;;  %v1688_v45 = vld [vmem:[#allocation2 + $0x74] ss:$8 sps:$4 sm:$0xff]   ;;  %v1692_v47 = vld [vmem:[#allocation2 + $0x70] ss:$8 sps:$4 sm:$0xff]   ;;  %v1694_v49 = vld [vmem:[#allocation2 + $0x84] ss:$8 sps:$4 sm:$0xff]  }
  0x2d   :  { %v1690_v46 = vld [vmem:[#allocation2 + $0x174] ss:$8 sps:$4 sm:$0xff]   ;;  %v1693_v48 = vld [vmem:[#allocation2 + $0x170] ss:$8 sps:$4 sm:$0xff]   ;;  %v1696_v50 = vld [vmem:[#allocation2 + $0x184] ss:$8 sps:$4 sm:$0xff]  }
  0x2e   :  { %v1698_v51 = vld [vmem:[#allocation2 + $0x80] ss:$8 sps:$4 sm:$0xff]   ;;  %v1700_v53 = vld [vmem:[#allocation2 + $0x94] ss:$8 sps:$4 sm:$0xff]   ;;  %v1704_v55 = vld [vmem:[#allocation2 + $0x90] ss:$8 sps:$4 sm:$0xff]  }
  0x2f   :  { %572 = vmatpush1.bf16.msra.mxu0 %v1634_v5  ;;  %1610 = vmatpush1.bf16.msra.mxu1 %v1634_v5  ;;  %v1699_v52 = vld [vmem:[#allocation2 + $0x180] ss:$8 sps:$4 sm:$0xff]   ;;  %v1702_v54 = vld [vmem:[#allocation2 + $0x194] ss:$8 sps:$4 sm:$0xff]   ;;  %v1705_v56 = vld [vmem:[#allocation2 + $0x190] ss:$8 sps:$4 sm:$0xff]  }
  0x30   :  { %573 = vmatprep.subr.bf16.mxu0 %v1814_v0  ;;  %1595 = vmatprep.subr.bf16.mxu1 %v1814_v0  ;;  %v1706_v57 = vld [vmem:[#allocation2 + $0xa4] ss:$8 sps:$4 sm:$0xff]   ;;  %v1710_v59 = vld [vmem:[#allocation2 + $0xa0] ss:$8 sps:$4 sm:$0xff]   ;;  %v1712_v61 = vld [vmem:[#allocation2 + $0xb4] ss:$8 sps:$4 sm:$0xff]  }
  0x31   :  { %v1708_v58 = vld [vmem:[#allocation2 + $0x1a4] ss:$8 sps:$4 sm:$0xff]   ;;  %v1711_v60 = vld [vmem:[#allocation2 + $0x1a0] ss:$8 sps:$4 sm:$0xff]   ;;  %v1714_v62 = vld [vmem:[#allocation2 + $0x1b4] ss:$8 sps:$4 sm:$0xff]  }
  0x32   :  { %v1716_v63 = vld [vmem:[#allocation2 + $0xb0] ss:$8 sps:$4 sm:$0xff]   ;;  %v1718_v1 = vld [vmem:[#allocation2 + $0xc4] ss:$8 sps:$4 sm:$0xff]   ;;  %v1722_v3 = vld [vmem:[#allocation2 + $0xc0] ss:$8 sps:$4 sm:$0xff]  }
  0x33   :  { %574 = vmatpush1.bf16.msra.mxu0 %v1635_v7  ;;  %1611 = vmatpush1.bf16.msra.mxu1 %v1635_v7  ;;  %v1720_v2 = vld [vmem:[#allocation2 + $0x1c4] ss:$8 sps:$4 sm:$0xff]   ;;  %v1723_v4 = vld [vmem:[#allocation2 + $0x1c0] ss:$8 sps:$4 sm:$0xff]   ;;  %v1724_v5 = vld [vmem:[#allocation2 + $0xd4] ss:$8 sps:$4 sm:$0xff]  }
  0x34   :  { %575 = vmatprep.subr.bf16.mxu0 %v1814_v0  ;;  %1596 = vmatprep.subr.bf16.mxu1 %v1814_v0  ;;  %v1726_v6 = vld [vmem:[#allocation2 + $0x1d4] ss:$8 sps:$4 sm:$0xff]   ;;  %v1728_v7 = vld [vmem:[#allocation2 + $0xd0] ss:$8 sps:$4 sm:$0xff]  }
  0x35   :  { %v1729_v8 = vld [vmem:[#allocation2 + $0x1d0] ss:$8 sps:$4 sm:$0xff]  }
  0x37   :  { %576 = vmatpush1.bf16.msra.mxu0 %v1636_v9  ;;  %1612 = vmatpush1.bf16.msra.mxu1 %v1636_v9  ;;  %v1730_v9 = vld [vmem:[#allocation2 + $0xe4] ss:$8 sps:$4 sm:$0xff]  }
  0x38   :  { %577 = vmatprep.subr.bf16.mxu0 %v1814_v0  ;;  %1597 = vmatprep.subr.bf16.mxu1 %v1814_v0 }
  0x3b   :  { %578 = vmatpush1.bf16.msra.mxu0 %v1637_v10  ;;  %1613 = vmatpush1.bf16.msra.mxu1 %v1637_v10  ;;  %v1732_v10 = vld [vmem:[#allocation2 + $0x1e4] ss:$8 sps:$4 sm:$0xff]  }
  0x3c   :  { %579 = vmatprep.subr.bf16.mxu0 %v1814_v0  ;;  %1598 = vmatprep.subr.bf16.mxu1 %v1814_v0 }
  0x3f   :  { %580 = vmatpush2.bf16.msra.mxu0 %v1638_v11  ;;  %1614 = vmatpush2.bf16.msra.mxu1 %v1638_v11  ;;  %v1734_v11 = vld [vmem:[#allocation2 + $0xe0] ss:$8 sps:$4 sm:$0xff]  }
  0x40   :  { %581 = vmatprep.subr.bf16.mxu0 %v1814_v0  ;;  %1599 = vmatprep.subr.bf16.mxu1 %v1814_v0 }
  0x43   :  { %582 = vmatpush2.bf16.msra.mxu0 %v1639_v12  ;;  %1615 = vmatpush2.bf16.msra.mxu1 %v1639_v12  ;;  %v1735_v12 = vld [vmem:[#allocation2 + $0x1e0] ss:$8 sps:$4 sm:$0xff]  }
  0x44   :  { %583 = vmatprep.subr.bf16.mxu0 %v1814_v0  ;;  %1600 = vmatprep.subr.bf16.mxu1 %v1814_v0 }
  0x47   :  { %584 = vmatpush2.bf16.msra.mxu0 %v1640_v13  ;;  %1616 = vmatpush2.bf16.msra.mxu1 %v1640_v13  ;;  %v1736_v13 = vld [vmem:[#allocation2 + $0xf4] ss:$8 sps:$4 sm:$0xff]  }
  0x48   :  { %585 = vmatprep.subr.bf16.mxu0 %v1814_v0  ;;  %1601 = vmatprep.subr.bf16.mxu1 %v1814_v0 }
  0x4b   :  { %586 = vmatpush2.bf16.msra.mxu0 %v1641_v14  ;;  %1617 = vmatpush2.bf16.msra.mxu1 %v1641_v14  ;;  %v1738_v14 = vld [vmem:[#allocation2 + $0x1f4] ss:$8 sps:$4 sm:$0xff]  }
  0x4c   :  { %587 = vmatprep.subr.bf16.mxu0 %v1814_v0  ;;  %1602 = vmatprep.subr.bf16.mxu1 %v1814_v0 }
  0x4f   :  { %588 = vmatpush2.bf16.msra.mxu0 %v1642_v15  ;;  %1618 = vmatpush2.bf16.msra.mxu1 %v1642_v15  ;;  %v1740_v15 = vld [vmem:[#allocation2 + $0xf0] ss:$8 sps:$4 sm:$0xff]  }
  0x50   :  { %589 = vmatprep.subr.bf16.mxu0 %v1814_v0  ;;  %1603 = vmatprep.subr.bf16.mxu1 %v1814_v0 }
  0x53   :  { %590 = vmatpush2.bf16.msra.mxu0 %v1643_v16  ;;  %1619 = vmatpush2.bf16.msra.mxu1 %v1643_v16  ;;  %v1741_v16 = vld [vmem:[#allocation2 + $0x1f0] ss:$8 sps:$4 sm:$0xff]  }
  0x54   :  { %591 = vmatprep.subr.bf16.mxu0 %v1814_v0  ;;  %1604 = vmatprep.subr.bf16.mxu1 %v1814_v0 }
  0x57   :  { %592 = vmatpush2.bf16.msra.mxu0 %v1644_v17  ;;  %1620 = vmatpush2.bf16.msra.mxu1 %v1644_v17 }
  0x58   :  { %593 = vmatprep.subr.bf16.mxu0 %v1814_v0  ;;  %1605 = vmatprep.subr.bf16.mxu1 %v1814_v0  ;;  %v1717_v0 = vld [vmem:[#allocation2 + $0x1b0] ss:$8 sps:$4 sm:$0xff]  }
  0x5b   :  { %594 = vmatpush2.bf16.msra.mxu0 %v1645_v18  ;;  %1621 = vmatpush2.bf16.msra.mxu1 %v1645_v18 }
  0x5e   :  { %596 = vmatmul.mubr.bf16.vlgmr.msra.gmra.mxu0 %v1646_v19  ;;  %724 = vmatmul.mubr.bf16.vlgmr.msra.gmra.mxu1 %v1649_v20  ;;  %v1880_v19 = vld [vmem:[%s1954_s2] ss:$0 sm:$0xff]  ;;  %s1815_s2 = smov [#allocation7]  }
  0x5f   :  { %603 = vmatprep.mubr.bf16.mxu0 %v1652_v21  ;;  %731 = vmatprep.mubr.bf16.mxu1 %v1654_v22  ;;  %s1177_s26 = sshll.u32 %s1815_s2, 4  ;;  %s1178_s26 = int_to_ptr.vmem [resolvable:$true] %s1177_s26 }
  0x60   :  { %s1782_s27 = scalar_lea.vmem %s1178_s26, 4096  ;;  %p1787_p11 = scmp.lt.s32.totalorder %s1178_s26, %s1178_s26 }
  0x61   :  { %p1783_p10 = scmp.ne.s32.totalorder %s1178_s26, %s1782_s27  ;;  %p1788_p12 = scmp.lt.s32.totalorder %s1782_s27, %s1782_s27 }
  0x63   :  { %p1789_p13 = por %p1788_p12, %p1787_p11 }
  0x65   :  { %p1790_p0 = pnand %p1789_p13, %p1783_p10 }
  0x66   :  { %604 = vmatmul.mubr.bf16.gmra.mxu0 %v1656_v23  ;;  %732 = vmatmul.mubr.bf16.gmra.mxu1 %v1657_v24 }
  0x67   :  { %611 = vmatprep.mubr.bf16.mxu0 %v1658_v25  ;;  %739 = vmatprep.mubr.bf16.mxu1 %v1660_v26 }
  0x6e   :  { %612 = vmatmul.mubr.bf16.gmra.mxu0 %v1662_v27  ;;  %740 = vmatmul.mubr.bf16.gmra.mxu1 %v1663_v28 }
  0x6f   :  { %619 = vmatprep.mubr.bf16.mxu0 %v1664_v29  ;;  %747 = vmatprep.mubr.bf16.mxu1 %v1666_v30 }
  0x76   :  { %620 = vmatmul.mubr.bf16.gmra.mxu0 %v1668_v31  ;;  %748 = vmatmul.mubr.bf16.gmra.mxu1 %v1669_v32 }
  0x77   :  { %627 = vmatprep.mubr.bf16.mxu0 %v1670_v33  ;;  %755 = vmatprep.mubr.bf16.mxu1 %v1672_v34 }
  0x7e   :  { %628 = vmatmul.mubr.bf16.gmra.mxu0 %v1674_v35  ;;  %756 = vmatmul.mubr.bf16.gmra.mxu1 %v1675_v36 }
  0x7f   :  { %635 = vmatprep.mubr.bf16.mxu0 %v1676_v37  ;;  %763 = vmatprep.mubr.bf16.mxu1 %v1678_v38 }
  0x86   :  { %636 = vmatmul.mubr.bf16.gmra.mxu0 %v1680_v39  ;;  %764 = vmatmul.mubr.bf16.gmra.mxu1 %v1681_v40 }
  0x87   :  { %643 = vmatprep.mubr.bf16.mxu0 %v1682_v41  ;;  %771 = vmatprep.mubr.bf16.mxu1 %v1684_v42 }
  0x8e   :  { %644 = vmatmul.mubr.bf16.gmra.mxu0 %v1686_v43  ;;  %772 = vmatmul.mubr.bf16.gmra.mxu1 %v1687_v44 }
  0x8f   :  { %651 = vmatprep.mubr.bf16.mxu0 %v1688_v45  ;;  %779 = vmatprep.mubr.bf16.mxu1 %v1690_v46 }
  0x96   :  { %652 = vmatmul.mubr.bf16.gmra.mxu0 %v1692_v47  ;;  %780 = vmatmul.mubr.bf16.gmra.mxu1 %v1693_v48 }
  0x97   :  { %659 = vmatprep.mubr.bf16.mxu0 %v1694_v49  ;;  %787 = vmatprep.mubr.bf16.mxu1 %v1696_v50 }
  0x9e   :  { %660 = vmatmul.mubr.bf16.gmra.mxu0 %v1698_v51  ;;  %788 = vmatmul.mubr.bf16.gmra.mxu1 %v1699_v52 }
  0x9f   :  { %667 = vmatprep.mubr.bf16.mxu0 %v1700_v53  ;;  %795 = vmatprep.mubr.bf16.mxu1 %v1702_v54 }
  0xa6   :  { %668 = vmatmul.mubr.bf16.gmra.mxu0 %v1704_v55  ;;  %796 = vmatmul.mubr.bf16.gmra.mxu1 %v1705_v56 }
  0xa7   :  { %675 = vmatprep.mubr.bf16.mxu0 %v1706_v57  ;;  %803 = vmatprep.mubr.bf16.mxu1 %v1708_v58 }
  0xae   :  { %676 = vmatmul.mubr.bf16.gmra.mxu0 %v1710_v59  ;;  %804 = vmatmul.mubr.bf16.gmra.mxu1 %v1711_v60 }
  0xaf   :  { %683 = vmatprep.mubr.bf16.mxu0 %v1712_v61  ;;  %811 = vmatprep.mubr.bf16.mxu1 %v1714_v62 }
  0xb6   :  { %684 = vmatmul.mubr.bf16.gmra.mxu0 %v1716_v63  ;;  %812 = vmatmul.mubr.bf16.gmra.mxu1 %v1717_v0 }
  0xb7   :  { %691 = vmatprep.mubr.bf16.mxu0 %v1718_v1  ;;  %819 = vmatprep.mubr.bf16.mxu1 %v1720_v2 }
  0xbe   :  { %692 = vmatmul.mubr.bf16.gmra.mxu0 %v1722_v3  ;;  %820 = vmatmul.mubr.bf16.gmra.mxu1 %v1723_v4 }
  0xbf   :  { %699 = vmatprep.mubr.bf16.mxu0 %v1724_v5  ;;  %827 = vmatprep.mubr.bf16.mxu1 %v1726_v6 }
  0xc6   :  { %700 = vmatmul.mubr.bf16.gmra.mxu0 %v1728_v7  ;;  %828 = vmatmul.mubr.bf16.gmra.mxu1 %v1729_v8 }
  0xc7   :  { %707 = vmatprep.mubr.bf16.mxu0 %v1730_v9  ;;  %835 = vmatprep.mubr.bf16.mxu1 %v1732_v10 }
  0xce   :  { %708 = vmatmul.mubr.bf16.gmra.mxu0 %v1734_v11  ;;  %836 = vmatmul.mubr.bf16.gmra.mxu1 %v1735_v12 }
  0xcf   :  { %715 = vmatprep.mubr.bf16.mxu0 %v1736_v13  ;;  %843 = vmatprep.mubr.bf16.mxu1 %v1738_v14 }
  0xd6   :  { %716 = vmatmul.mubr.bf16.gmra.mxu0 %v1740_v15  ;;  %844 = vmatmul.mubr.bf16.gmra.mxu1 %v1741_v16 }
 0x11e   :  { %v597_v17 = vpop.f32.mrf.mxu0  ;;  %v725_v18 = vpop.f32.mrf.mxu1 }
 0x11f   :  { %v598_v24 = vadd.f32 %v1880_v19, %v597_v17  ;;  %v726_v25 = vadd.f32 %v1880_v19, %v725_v18 }
 0x120   :  { %v599_v20 = vpop.f32.mrf.mxu0  ;;  %v727_v21 = vpop.f32.mrf.mxu1 }
 0x122   :  { %v600_v22 = vpop.f32.mrf.mxu0  ;;  %v728_v23 = vpop.f32.mrf.mxu1 }
 0x123   :  { %v601_v26 = vadd.f32 %v1880_v19, %v600_v22  ;;  %v729_v27 = vadd.f32 %v1880_v19, %v728_v23 }
 0x124   :  { %v602_v28 = vpop.f32.mrf.mxu0  ;;  %v730_v29 = vpop.f32.mrf.mxu1 }
 0x125   :  { %v1402_v30 = vpack.c.bf16 %v601_v26, %v598_v24  ;;  %v1482_v31 = vpack.c.bf16 %v729_v27, %v726_v25 }
 0x126   :  { %v605_v32 = vpop.f32.mrf.mxu0  ;;  %v733_v33 = vpop.f32.mrf.mxu1 }
 0x127   :  { %1403 = vst [vmem:[#allocation7] sm:$0xff] %v1402_v30   ;;  %1574 = vst [vmem:[#allocation7 + $0x80] sm:$0xff] %v1482_v31   ;;  %v606_v38 = vadd.f32 %v1880_v19, %v605_v32  ;;  %v734_v39 = vadd.f32 %v1880_v19, %v733_v33 }
 0x128   :  { %v607_v34 = vpop.f32.mrf.mxu0  ;;  %v735_v35 = vpop.f32.mrf.mxu1 }
 0x12a   :  { %v608_v36 = vpop.f32.mrf.mxu0  ;;  %v736_v37 = vpop.f32.mrf.mxu1 }
 0x12b   :  { %v609_v40 = vadd.f32 %v1880_v19, %v608_v36  ;;  %v737_v41 = vadd.f32 %v1880_v19, %v736_v37 }
 0x12c   :  { %v610_v42 = vpop.f32.mrf.mxu0  ;;  %v738_v43 = vpop.f32.mrf.mxu1 }
 0x12d   :  { %v1407_v44 = vpack.c.bf16 %v609_v40, %v606_v38  ;;  %v1487_v45 = vpack.c.bf16 %v737_v41, %v734_v39 }
 0x12e   :  { %v613_v46 = vpop.f32.mrf.mxu0  ;;  %v741_v47 = vpop.f32.mrf.mxu1 }
 0x12f   :  { %1559 = vst [vmem:[#allocation7 + $0x8] sm:$0xff] %v1407_v44   ;;  %1575 = vst [vmem:[#allocation7 + $0x88] sm:$0xff] %v1487_v45   ;;  %v614_v52 = vadd.f32 %v1880_v19, %v613_v46  ;;  %v742_v53 = vadd.f32 %v1880_v19, %v741_v47 }
 0x130   :  { %v615_v48 = vpop.f32.mrf.mxu0  ;;  %v743_v49 = vpop.f32.mrf.mxu1 }
 0x132   :  { %v616_v50 = vpop.f32.mrf.mxu0  ;;  %v744_v51 = vpop.f32.mrf.mxu1 }
 0x133   :  { %v617_v54 = vadd.f32 %v1880_v19, %v616_v50  ;;  %v745_v55 = vadd.f32 %v1880_v19, %v744_v51 }
 0x134   :  { %v618_v56 = vpop.f32.mrf.mxu0  ;;  %v746_v57 = vpop.f32.mrf.mxu1 }
 0x135   :  { %v1412_v58 = vpack.c.bf16 %v617_v54, %v614_v52  ;;  %v1492_v59 = vpack.c.bf16 %v745_v55, %v742_v53 }
 0x136   :  { %v621_v60 = vpop.f32.mrf.mxu0  ;;  %v749_v61 = vpop.f32.mrf.mxu1 }
 0x137   :  { %1560 = vst [vmem:[#allocation7 + $0x10] sm:$0xff] %v1412_v58   ;;  %1576 = vst [vmem:[#allocation7 + $0x90] sm:$0xff] %v1492_v59   ;;  %v622_v2 = vadd.f32 %v1880_v19, %v621_v60  ;;  %v750_v3 = vadd.f32 %v1880_v19, %v749_v61 }
 0x138   :  { %v623_v62 = vpop.f32.mrf.mxu0  ;;  %v751_v63 = vpop.f32.mrf.mxu1 }
 0x13a   :  { %v624_v0 = vpop.f32.mrf.mxu0  ;;  %v752_v1 = vpop.f32.mrf.mxu1 }
 0x13b   :  { %v625_v4 = vadd.f32 %v1880_v19, %v624_v0  ;;  %v753_v5 = vadd.f32 %v1880_v19, %v752_v1 }
 0x13c   :  { %v626_v6 = vpop.f32.mrf.mxu0  ;;  %v754_v7 = vpop.f32.mrf.mxu1 }
 0x13d   :  { %v1417_v8 = vpack.c.bf16 %v625_v4, %v622_v2  ;;  %v1497_v9 = vpack.c.bf16 %v753_v5, %v750_v3 }
 0x13e   :  { %v629_v10 = vpop.f32.mrf.mxu0  ;;  %v757_v11 = vpop.f32.mrf.mxu1 }
 0x13f   :  { %1561 = vst [vmem:[#allocation7 + $0x18] sm:$0xff] %v1417_v8   ;;  %1577 = vst [vmem:[#allocation7 + $0x98] sm:$0xff] %v1497_v9   ;;  %v630_v16 = vadd.f32 %v1880_v19, %v629_v10  ;;  %v758_v17 = vadd.f32 %v1880_v19, %v757_v11 }
 0x140   :  { %v631_v12 = vpop.f32.mrf.mxu0  ;;  %v759_v13 = vpop.f32.mrf.mxu1 }
 0x142   :  { %v632_v14 = vpop.f32.mrf.mxu0  ;;  %v760_v15 = vpop.f32.mrf.mxu1 }
 0x143   :  { %v633_v18 = vadd.f32 %v1880_v19, %v632_v14  ;;  %v761_v20 = vadd.f32 %v1880_v19, %v760_v15 }
 0x144   :  { %v634_v21 = vpop.f32.mrf.mxu0  ;;  %v762_v22 = vpop.f32.mrf.mxu1 }
 0x145   :  { %v1422_v23 = vpack.c.bf16 %v633_v18, %v630_v16  ;;  %v1502_v24 = vpack.c.bf16 %v761_v20, %v758_v17 }
 0x146   :  { %v637_v25 = vpop.f32.mrf.mxu0  ;;  %v765_v26 = vpop.f32.mrf.mxu1 }
 0x147   :  { %1562 = vst [vmem:[#allocation7 + $0x20] sm:$0xff] %v1422_v23   ;;  %1578 = vst [vmem:[#allocation7 + $0xa0] sm:$0xff] %v1502_v24   ;;  %v638_v31 = vadd.f32 %v1880_v19, %v637_v25  ;;  %v766_v32 = vadd.f32 %v1880_v19, %v765_v26 }
 0x148   :  { %v639_v27 = vpop.f32.mrf.mxu0  ;;  %v767_v28 = vpop.f32.mrf.mxu1 }
 0x14a   :  { %v640_v29 = vpop.f32.mrf.mxu0  ;;  %v768_v30 = vpop.f32.mrf.mxu1 }
 0x14b   :  { %v641_v33 = vadd.f32 %v1880_v19, %v640_v29  ;;  %v769_v34 = vadd.f32 %v1880_v19, %v768_v30 }
 0x14c   :  { %v642_v35 = vpop.f32.mrf.mxu0  ;;  %v770_v36 = vpop.f32.mrf.mxu1 }
 0x14d   :  { %v1427_v37 = vpack.c.bf16 %v641_v33, %v638_v31  ;;  %v1507_v38 = vpack.c.bf16 %v769_v34, %v766_v32 }
 0x14e   :  { %v645_v39 = vpop.f32.mrf.mxu0  ;;  %v773_v40 = vpop.f32.mrf.mxu1 }
 0x14f   :  { %1563 = vst [vmem:[#allocation7 + $0x28] sm:$0xff] %v1427_v37   ;;  %1579 = vst [vmem:[#allocation7 + $0xa8] sm:$0xff] %v1507_v38   ;;  %v646_v45 = vadd.f32 %v1880_v19, %v645_v39  ;;  %v774_v46 = vadd.f32 %v1880_v19, %v773_v40 }
 0x150   :  { %v647_v41 = vpop.f32.mrf.mxu0  ;;  %v775_v42 = vpop.f32.mrf.mxu1 }
 0x152   :  { %v648_v43 = vpop.f32.mrf.mxu0  ;;  %v776_v44 = vpop.f32.mrf.mxu1 }
 0x153   :  { %v649_v47 = vadd.f32 %v1880_v19, %v648_v43  ;;  %v777_v48 = vadd.f32 %v1880_v19, %v776_v44 }
 0x154   :  { %v650_v49 = vpop.f32.mrf.mxu0  ;;  %v778_v50 = vpop.f32.mrf.mxu1 }
 0x155   :  { %v1432_v51 = vpack.c.bf16 %v649_v47, %v646_v45  ;;  %v1512_v52 = vpack.c.bf16 %v777_v48, %v774_v46 }
 0x156   :  { %v653_v53 = vpop.f32.mrf.mxu0  ;;  %v781_v54 = vpop.f32.mrf.mxu1 }
 0x157   :  { %1564 = vst [vmem:[#allocation7 + $0x30] sm:$0xff] %v1432_v51   ;;  %1580 = vst [vmem:[#allocation7 + $0xb0] sm:$0xff] %v1512_v52   ;;  %v654_v59 = vadd.f32 %v1880_v19, %v653_v53  ;;  %v782_v60 = vadd.f32 %v1880_v19, %v781_v54 }
 0x158   :  { %v655_v55 = vpop.f32.mrf.mxu0  ;;  %v783_v56 = vpop.f32.mrf.mxu1 }
 0x15a   :  { %v656_v57 = vpop.f32.mrf.mxu0  ;;  %v784_v58 = vpop.f32.mrf.mxu1 }
 0x15b   :  { %v657_v61 = vadd.f32 %v1880_v19, %v656_v57  ;;  %v785_v62 = vadd.f32 %v1880_v19, %v784_v58 }
 0x15c   :  { %v658_v63 = vpop.f32.mrf.mxu0  ;;  %v786_v0 = vpop.f32.mrf.mxu1 }
 0x15d   :  { %v1437_v1 = vpack.c.bf16 %v657_v61, %v654_v59  ;;  %v1517_v2 = vpack.c.bf16 %v785_v62, %v782_v60 }
 0x15e   :  { %v661_v3 = vpop.f32.mrf.mxu0  ;;  %v789_v4 = vpop.f32.mrf.mxu1 }
 0x15f   :  { %1565 = vst [vmem:[#allocation7 + $0x38] sm:$0xff] %v1437_v1   ;;  %1581 = vst [vmem:[#allocation7 + $0xb8] sm:$0xff] %v1517_v2   ;;  %v662_v9 = vadd.f32 %v1880_v19, %v661_v3  ;;  %v790_v10 = vadd.f32 %v1880_v19, %v789_v4 }
 0x160   :  { %v663_v5 = vpop.f32.mrf.mxu0  ;;  %v791_v6 = vpop.f32.mrf.mxu1 }
 0x162   :  { %v664_v7 = vpop.f32.mrf.mxu0  ;;  %v792_v8 = vpop.f32.mrf.mxu1 }
 0x163   :  { %v665_v11 = vadd.f32 %v1880_v19, %v664_v7  ;;  %v793_v12 = vadd.f32 %v1880_v19, %v792_v8 }
 0x164   :  { %v666_v13 = vpop.f32.mrf.mxu0  ;;  %v794_v14 = vpop.f32.mrf.mxu1 }
 0x165   :  { %v1442_v15 = vpack.c.bf16 %v665_v11, %v662_v9  ;;  %v1522_v16 = vpack.c.bf16 %v793_v12, %v790_v10 }
 0x166   :  { %v669_v17 = vpop.f32.mrf.mxu0  ;;  %v797_v18 = vpop.f32.mrf.mxu1 }
 0x167   :  { %1566 = vst [vmem:[#allocation7 + $0x40] sm:$0xff] %v1442_v15   ;;  %1582 = vst [vmem:[#allocation7 + $0xc0] sm:$0xff] %v1522_v16   ;;  %v670_v24 = vadd.f32 %v1880_v19, %v669_v17  ;;  %v798_v25 = vadd.f32 %v1880_v19, %v797_v18 }
 0x168   :  { %v671_v20 = vpop.f32.mrf.mxu0  ;;  %v799_v21 = vpop.f32.mrf.mxu1 }
 0x16a   :  { %v672_v22 = vpop.f32.mrf.mxu0  ;;  %v800_v23 = vpop.f32.mrf.mxu1 }
 0x16b   :  { %v673_v26 = vadd.f32 %v1880_v19, %v672_v22  ;;  %v801_v27 = vadd.f32 %v1880_v19, %v800_v23 }
 0x16c   :  { %v674_v28 = vpop.f32.mrf.mxu0  ;;  %v802_v29 = vpop.f32.mrf.mxu1 }
 0x16d   :  { %v1447_v30 = vpack.c.bf16 %v673_v26, %v670_v24  ;;  %v1527_v31 = vpack.c.bf16 %v801_v27, %v798_v25 }
 0x16e   :  { %v677_v32 = vpop.f32.mrf.mxu0  ;;  %v805_v33 = vpop.f32.mrf.mxu1 }
 0x16f   :  { %1567 = vst [vmem:[#allocation7 + $0x48] sm:$0xff] %v1447_v30   ;;  %1583 = vst [vmem:[#allocation7 + $0xc8] sm:$0xff] %v1527_v31   ;;  %v678_v38 = vadd.f32 %v1880_v19, %v677_v32  ;;  %v806_v39 = vadd.f32 %v1880_v19, %v805_v33 }
 0x170   :  { %v679_v34 = vpop.f32.mrf.mxu0  ;;  %v807_v35 = vpop.f32.mrf.mxu1 }
 0x172   :  { %v680_v36 = vpop.f32.mrf.mxu0  ;;  %v808_v37 = vpop.f32.mrf.mxu1 }
 0x173   :  { %v681_v40 = vadd.f32 %v1880_v19, %v680_v36  ;;  %v809_v41 = vadd.f32 %v1880_v19, %v808_v37 }
 0x174   :  { %v682_v42 = vpop.f32.mrf.mxu0  ;;  %v810_v43 = vpop.f32.mrf.mxu1 }
 0x175   :  { %v1452_v44 = vpack.c.bf16 %v681_v40, %v678_v38  ;;  %v1532_v45 = vpack.c.bf16 %v809_v41, %v806_v39 }
 0x176   :  { %v685_v46 = vpop.f32.mrf.mxu0  ;;  %v813_v47 = vpop.f32.mrf.mxu1 }
 0x177   :  { %1568 = vst [vmem:[#allocation7 + $0x50] sm:$0xff] %v1452_v44   ;;  %1584 = vst [vmem:[#allocation7 + $0xd0] sm:$0xff] %v1532_v45   ;;  %v686_v52 = vadd.f32 %v1880_v19, %v685_v46  ;;  %v814_v53 = vadd.f32 %v1880_v19, %v813_v47 }
 0x178   :  { %v687_v48 = vpop.f32.mrf.mxu0  ;;  %v815_v49 = vpop.f32.mrf.mxu1 }
 0x17a   :  { %v688_v50 = vpop.f32.mrf.mxu0  ;;  %v816_v51 = vpop.f32.mrf.mxu1 }
 0x17b   :  { %v689_v54 = vadd.f32 %v1880_v19, %v688_v50  ;;  %v817_v55 = vadd.f32 %v1880_v19, %v816_v51 }
 0x17c   :  { %v690_v56 = vpop.f32.mrf.mxu0  ;;  %v818_v57 = vpop.f32.mrf.mxu1 }
 0x17d   :  { %v1457_v58 = vpack.c.bf16 %v689_v54, %v686_v52  ;;  %v1537_v59 = vpack.c.bf16 %v817_v55, %v814_v53 }
 0x17e   :  { %v693_v60 = vpop.f32.mrf.mxu0  ;;  %v821_v61 = vpop.f32.mrf.mxu1 }
 0x17f   :  { %1569 = vst [vmem:[#allocation7 + $0x58] sm:$0xff] %v1457_v58   ;;  %1585 = vst [vmem:[#allocation7 + $0xd8] sm:$0xff] %v1537_v59   ;;  %v694_v2 = vadd.f32 %v1880_v19, %v693_v60  ;;  %v822_v3 = vadd.f32 %v1880_v19, %v821_v61 }
 0x180   :  { %v695_v62 = vpop.f32.mrf.mxu0  ;;  %v823_v63 = vpop.f32.mrf.mxu1 }
 0x182   :  { %v696_v0 = vpop.f32.mrf.mxu0  ;;  %v824_v1 = vpop.f32.mrf.mxu1 }
 0x183   :  { %v697_v4 = vadd.f32 %v1880_v19, %v696_v0  ;;  %v825_v5 = vadd.f32 %v1880_v19, %v824_v1 }
 0x184   :  { %v698_v6 = vpop.f32.mrf.mxu0  ;;  %v826_v7 = vpop.f32.mrf.mxu1 }
 0x185   :  { %v1462_v8 = vpack.c.bf16 %v697_v4, %v694_v2  ;;  %v1542_v9 = vpack.c.bf16 %v825_v5, %v822_v3 }
 0x186   :  { %v701_v10 = vpop.f32.mrf.mxu0  ;;  %v829_v11 = vpop.f32.mrf.mxu1 }
 0x187   :  { %1570 = vst [vmem:[#allocation7 + $0x60] sm:$0xff] %v1462_v8   ;;  %1586 = vst [vmem:[#allocation7 + $0xe0] sm:$0xff] %v1542_v9   ;;  %v702_v16 = vadd.f32 %v1880_v19, %v701_v10  ;;  %v830_v17 = vadd.f32 %v1880_v19, %v829_v11 }
 0x188   :  { %v703_v12 = vpop.f32.mrf.mxu0  ;;  %v831_v13 = vpop.f32.mrf.mxu1 }
 0x18a   :  { %v704_v14 = vpop.f32.mrf.mxu0  ;;  %v832_v15 = vpop.f32.mrf.mxu1 }
 0x18b   :  { %v705_v18 = vadd.f32 %v1880_v19, %v704_v14  ;;  %v833_v20 = vadd.f32 %v1880_v19, %v832_v15 }
 0x18c   :  { %v706_v21 = vpop.f32.mrf.mxu0  ;;  %v834_v22 = vpop.f32.mrf.mxu1 }
 0x18d   :  { %v1467_v23 = vpack.c.bf16 %v705_v18, %v702_v16  ;;  %v1547_v24 = vpack.c.bf16 %v833_v20, %v830_v17 }
 0x18e   :  { %v709_v25 = vpop.f32.mrf.mxu0  ;;  %v837_v26 = vpop.f32.mrf.mxu1 }
 0x18f   :  { %1571 = vst [vmem:[#allocation7 + $0x68] sm:$0xff] %v1467_v23   ;;  %1587 = vst [vmem:[#allocation7 + $0xe8] sm:$0xff] %v1547_v24   ;;  %v710_v31 = vadd.f32 %v1880_v19, %v709_v25  ;;  %v838_v32 = vadd.f32 %v1880_v19, %v837_v26 }
 0x190   :  { %v711_v27 = vpop.f32.mrf.mxu0  ;;  %v839_v28 = vpop.f32.mrf.mxu1 }
 0x192   :  { %v712_v29 = vpop.f32.mrf.mxu0  ;;  %v840_v30 = vpop.f32.mrf.mxu1 }
 0x193   :  { %v713_v33 = vadd.f32 %v1880_v19, %v712_v29  ;;  %v841_v34 = vadd.f32 %v1880_v19, %v840_v30 }
 0x194   :  { %v714_v35 = vpop.f32.mrf.mxu0  ;;  %v842_v36 = vpop.f32.mrf.mxu1 }
 0x195   :  { %v1472_v37 = vpack.c.bf16 %v713_v33, %v710_v31  ;;  %v1552_v38 = vpack.c.bf16 %v841_v34, %v838_v32 }
 0x196   :  { %v717_v39 = vpop.f32.mrf.mxu0  ;;  %v845_v40 = vpop.f32.mrf.mxu1 }
 0x197   :  { %1572 = vst [vmem:[#allocation7 + $0x70] sm:$0xff] %v1472_v37   ;;  %1588 = vst [vmem:[#allocation7 + $0xf0] sm:$0xff] %v1552_v38   ;;  %v718_v45 = vadd.f32 %v1880_v19, %v717_v39  ;;  %v846_v46 = vadd.f32 %v1880_v19, %v845_v40 }
 0x198   :  { %v719_v41 = vpop.f32.mrf.mxu0  ;;  %v847_v42 = vpop.f32.mrf.mxu1 }
 0x19a   :  { %v720_v43 = vpop.f32.mrf.mxu0  ;;  %v848_v44 = vpop.f32.mrf.mxu1 }
 0x19b   :  { %v721_v47 = vadd.f32 %v1880_v19, %v720_v43  ;;  %v849_v48 = vadd.f32 %v1880_v19, %v848_v44 }
 0x19c   :  { %v722_v49 = vpop.f32.mrf.mxu0  ;;  %v850_v50 = vpop.f32.mrf.mxu1 }
 0x19d   :  { %v1477_v51 = vpack.c.bf16 %v721_v47, %v718_v45  ;;  %v1557_v52 = vpack.c.bf16 %v849_v48, %v846_v46 }
 0x19f   :  { %1573 = vst [vmem:[#allocation7 + $0x78] sm:$0xff] %v1477_v51   ;;  %1589 = vst [vmem:[#allocation7 + $0xf8] sm:$0xff] %v1557_v52  }
 0x1a0   :  { %1793 = shalt.err (!%p1790_p0)
}
 0x1a1   :  { %1183 = dma.vmem_to_hbm [thread:$0]  %s1178_s26, 4096, %s1955_s3, [#allocation4], %s1812_s22, %s1812_s22, %s1813_s23  }
 0x1a2   :  { %1806 = dma.done.wait [#allocation4], 4096  }
 0x1a3   :  { %1807 = vsyncadd [#allocation4], 4294963200 }
 0x1a4   :  { %1187 = vsyncpa [#allocation3], 1 }
 0x1a5   :  { %1188 = vsyncpa [#allocation6], 1 }
 0x1a6   :  { %1189 = vsyncpa [#allocation4], 1 }

</bundles_post_ra>
